<compile_context>
chip_gen: v7x
topology: tpu7x:2x2x1
jax: 0.10.0
libtpu: 0.0.40
codegen_flags: <defaults>
</compile_context>

<pallas_src>
import jax
import jax.numpy as jnp
from jax import lax
from jax.experimental import pallas as pl
from jax.experimental.pallas import tpu as pltpu


def ranking_kernel(w_ref, b_ref, v_ref, d_ref, o_ref):
    # w_ref: (out_dim, in_dim)   nn.Linear weight, resident across the grid
    # b_ref: (out_dim, 1)        bias (f32), broadcast over lanes
    # v_ref, d_ref: (in_dim, tn) columns = samples (module's native layout)
    # o_ref: (1, tn)             lane-dense cosine similarity per column
    w = w_ref[...]
    b = b_ref[...].astype(jnp.float32)

    # Linear applied to columns: W @ x + b, contraction over in_dim.
    # bf16 (or f32) inputs, f32 MXU accumulation.
    ev = jnp.dot(w, v_ref[...], preferred_element_type=jnp.float32) + b
    ed = jnp.dot(w, d_ref[...], preferred_element_type=jnp.float32) + b

    # CosineSimilarity(dim=1, eps=1e-6) in the transposed layout:
    # reduce over out_dim (sublane axis), one value per lane (column).
    dot = jnp.sum(ev * ed, axis=0, keepdims=True)      # (1, tn)
    nv2 = jnp.sum(ev * ev, axis=0, keepdims=True)
    nd2 = jnp.sum(ed * ed, axis=0, keepdims=True)

    eps = jnp.float32(1e-6)
    # max(sqrt(a)*sqrt(b), eps) == sqrt(max(a*b, eps*eps)); rsqrt on EUP.
    o_ref[...] = dot * lax.rsqrt(jnp.maximum(nv2 * nd2, eps * eps))


def _round_up(x, m):
    return -(-x // m) * m


def _choose_tile(in_dim, out_dim, N, in_bytes, w_bytes, block_n, vmem_budget_bytes):
    """Pick the lane-tile width tn (multiple of 256 where possible)."""
    # Residents: W + bias, double-buffered by the default pipeliner.
    resident = 2 * (out_dim * in_dim * w_bytes + out_dim * 4)
    # Per-lane VMEM cost of one output column across live buffers:
    #   v,d tiles (2 arrays x 2 buffers x in_dim), output (2 buffers, f32),
    #   ev/ed/products intermediates in f32 vregs (~4 * out_dim).
    per_lane = (2 * 2 * in_dim * in_bytes) + (2 * 4) + (4 * out_dim * 4)
    avail = max(vmem_budget_bytes - resident, 256 * per_lane)
    tn_cap = max(256, (avail // per_lane) // 256 * 256)
    tn = int(min(block_n, tn_cap))
    tn = max(256, (tn // 256) * 256)          # 256-wide MXU lane alignment

    if N <= 128:
        # Tiny problem: single full-extent block (exempt from 128 rule).
        return N
    if N <= tn:
        # Guarantee >= 2 grid steps so both v7x TensorCores get work.
        half = -(-N // 2)
        tn = _round_up(half, 128)
        if tn % 256 != 0 and N > 256:
            tn = _round_up(half, 256)
    return tn


def ranking_model_forward(vector, dictionary, weight, bias, *,
                          block_n=2048,
                          vmem_budget_bytes=40 * 1024 * 1024,
                          vmem_limit_bytes=48 * 1024 * 1024):
    """vector, dictionary: (in_dim, N); weight: (out_dim, in_dim); bias: (out_dim,).

    Streams vector/dictionary/weight in the caller's dtype (bf16 recommended:
    halves HBM traffic on this bandwidth-bound op), accumulates and does the
    cosine epilogue in f32.  Returns cosine similarity per column, shape (N,).
    """
    in_dim, N = vector.shape
    out_dim = weight.shape[0]
    assert dictionary.shape == (in_dim, N)
    assert weight.shape == (out_dim, in_dim)
    assert bias.shape == (out_dim,)

    in_bytes = jnp.dtype(vector.dtype).itemsize
    w_bytes = jnp.dtype(weight.dtype).itemsize

    tn = _choose_tile(in_dim, out_dim, N, in_bytes, w_bytes,
                      block_n, vmem_budget_bytes)
    grid = (pl.cdiv(N, tn),)

    b2 = bias.reshape(out_dim, 1).astype(jnp.float32)

    # Advisory cost for XLA's scheduler: this call is HBM-bound.
    bytes_accessed = int(2 * in_dim * N * in_bytes
                         + out_dim * in_dim * w_bytes
                         + out_dim * 4 + N * 4)
    flops = int(2 * (2 * out_dim * in_dim * N) + 6 * out_dim * N)
    cost = pl.CostEstimate(flops=flops, transcendentals=int(N),
                           bytes_accessed=bytes_accessed)

    out = pl.pallas_call(
        ranking_kernel,
        out_shape=jax.ShapeDtypeStruct((1, N), jnp.float32),
        grid_spec=pltpu.PrefetchScalarGridSpec(
            num_scalar_prefetch=0,
            grid=grid,
            in_specs=[
                # Weight/bias: constant block index -> stay resident in VMEM.
                pl.BlockSpec((out_dim, in_dim), lambda i: (0, 0)),
                pl.BlockSpec((out_dim, 1), lambda i: (0, 0)),
                # Streamed inputs, tiled over N (lane axis), double-buffered.
                pl.BlockSpec((in_dim, tn), lambda i: (0, i)),
                pl.BlockSpec((in_dim, tn), lambda i: (0, i)),
            ],
            out_specs=pl.BlockSpec((1, tn), lambda i: (0, i)),
        ),
        compiler_params=pltpu.CompilerParams(
            dimension_semantics=("parallel",),
            vmem_limit_bytes=int(vmem_limit_bytes),
        ),
        cost_estimate=cost,
    )(weight, b2, vector, dictionary)
    return out[0]  # (N,)


def reference_forward(vector, dictionary, weight, bias):
    """Pure-JAX reference of the PyTorch module (f32 math on the given values)."""
    v = vector.astype(jnp.float32).T @ weight.astype(jnp.float32).T + bias
    d = dictionary.astype(jnp.float32).T @ weight.astype(jnp.float32).T + bias
    dot = jnp.sum(v * d, axis=1)
    denom = jnp.maximum(jnp.linalg.norm(v, axis=1) * jnp.linalg.norm(d, axis=1),
                        1e-6)
    return dot / denom


if __name__ == "__main__":
    # Small shapes that still exercise a 2-step grid (tn=256) plus a padded
    # edge tile (384 = 256 + 128).
    in_dim, out_dim, N = 32, 16, 384

    key = jax.random.PRNGKey(0)
    k1, k2, k3, k4 = jax.random.split(key, 4)

    # nn.Linear-like uniform(-1/sqrt(in_dim), 1/sqrt(in_dim)) init.
    bound = 1.0 / (in_dim ** 0.5)
    weight = jax.random.uniform(k1, (out_dim, in_dim), jnp.float32,
                                -bound, bound).astype(jnp.bfloat16)
    bias = jax.random.uniform(k2, (out_dim,), jnp.float32, -bound, bound)

    # Inputs follow the module's convention: (in_dim, N); streamed as bf16.
    vector = jax.random.normal(k3, (in_dim, N), jnp.float32).astype(jnp.bfloat16)
    dictionary = jax.random.normal(k4, (in_dim, N), jnp.float32).astype(jnp.bfloat16)

    out = ranking_model_forward(vector, dictionary, weight, bias)
    out = jax.block_until_ready(out)

    ref = reference_forward(vector, dictionary, weight, bias)
    assert out.shape == (N,)
    assert jnp.allclose(out, ref, atol=2e-3, rtol=2e-3), (out, ref)

    print("KERNEL_OK")
</pallas_src>

<mosaic_0001>
module attributes {stable_mosaic.version = 11 : i64} {
  func.func @ranking_kernel(%arg0: i32, %arg1: memref<16x32xbf16, #tpu.memory_space<vmem>>, %arg2: memref<16x1xf32, #tpu.memory_space<vmem>>, %arg3: memref<32x256xbf16, #tpu.memory_space<vmem>>, %arg4: memref<32x256xbf16, #tpu.memory_space<vmem>>, %arg5: memref<1x256xf32, #tpu.memory_space<vmem>>) attributes {dimension_semantics = [#tpu.dimension_semantics<parallel>], iteration_bounds = array<i64: 2>, scalar_prefetch = 0 : i64, scratch_operands = 0 : i64, tpu.core_type = #tpu.core_type<tc>, window_params = [{pipeline_mode = #tpu.pipeline_mode<synchronous>, transform_indices = @transform_0, window_bounds = array<i64: 16, 32>}, {pipeline_mode = #tpu.pipeline_mode<synchronous>, transform_indices = @transform_1, window_bounds = array<i64: 16, 1>}, {transform_indices = @transform_2, window_bounds = array<i64: 32, 256>}, {transform_indices = @transform_3, window_bounds = array<i64: 32, 256>}, {transform_indices = @transform_4, window_bounds = array<i64: 1, 256>}]} {
    %c0 = arith.constant 0 : index
    %c0_0 = arith.constant 0 : index
    %0 = vector.load %arg1[%c0, %c0_0] : memref<16x32xbf16, #tpu.memory_space<vmem>>, vector<16x32xbf16>
    %c0_1 = arith.constant 0 : index
    %c0_2 = arith.constant 0 : index
    %1 = vector.load %arg2[%c0_1, %c0_2] : memref<16x1xf32, #tpu.memory_space<vmem>>, vector<16x1xf32>
    %c0_3 = arith.constant 0 : index
    %c0_4 = arith.constant 0 : index
    %2 = vector.load %arg3[%c0_3, %c0_4] : memref<32x256xbf16, #tpu.memory_space<vmem>>, vector<32x256xbf16>
    %cst = arith.constant dense<0.000000e+00> : vector<16x256xf32>
    %3 = tpu.matmul %0, %2, %cst {dimension_numbers = #tpu.dot_dimension_numbers<[1], [0], [0], [1], [0, 0, 1, 1], [], []>} : vector<16x32xbf16>, vector<32x256xbf16>, vector<16x256xf32> -> vector<16x256xf32>
    %4 = vector.broadcast %1 : vector<16x1xf32> to vector<16x256xf32>
    %5 = arith.addf %3, %4 : vector<16x256xf32>
    %c0_5 = arith.constant 0 : index
    %c0_6 = arith.constant 0 : index
    %6 = vector.load %arg4[%c0_5, %c0_6] : memref<32x256xbf16, #tpu.memory_space<vmem>>, vector<32x256xbf16>
    %cst_7 = arith.constant dense<0.000000e+00> : vector<16x256xf32>
    %7 = tpu.matmul %0, %6, %cst_7 {dimension_numbers = #tpu.dot_dimension_numbers<[1], [0], [0], [1], [0, 0, 1, 1], [], []>} : vector<16x32xbf16>, vector<32x256xbf16>, vector<16x256xf32> -> vector<16x256xf32>
    %8 = vector.broadcast %1 : vector<16x1xf32> to vector<16x256xf32>
    %9 = arith.addf %7, %8 : vector<16x256xf32>
    %10 = arith.mulf %5, %9 : vector<16x256xf32>
    %cst_8 = arith.constant dense<0.000000e+00> : vector<256xf32>
    %11 = vector.multi_reduction <add>, %10, %cst_8 [0] : vector<16x256xf32> to vector<256xf32>
    %12 = vector.shape_cast %11 : vector<256xf32> to vector<1x256xf32>
    %13 = arith.mulf %5, %5 : vector<16x256xf32>
    %cst_9 = arith.constant dense<0.000000e+00> : vector<256xf32>
    %14 = vector.multi_reduction <add>, %13, %cst_9 [0] : vector<16x256xf32> to vector<256xf32>
    %15 = vector.shape_cast %14 : vector<256xf32> to vector<1x256xf32>
    %16 = arith.mulf %9, %9 : vector<16x256xf32>
    %cst_10 = arith.constant dense<0.000000e+00> : vector<256xf32>
    %17 = vector.multi_reduction <add>, %16, %cst_10 [0] : vector<16x256xf32> to vector<256xf32>
    %18 = vector.shape_cast %17 : vector<256xf32> to vector<1x256xf32>
    %19 = arith.mulf %15, %18 : vector<1x256xf32>
    %cst_11 = arith.constant 9.99999997E-7 : f32
    %cst_12 = arith.constant 9.99999997E-7 : f32
    %20 = arith.mulf %cst_11, %cst_12 : f32
    %21 = vector.broadcast %20 : f32 to vector<1x256xf32>
    %22 = arith.maximumf %19, %21 : vector<1x256xf32>
    %23 = math.rsqrt %22 : vector<1x256xf32>
    %24 = arith.mulf %12, %23 : vector<1x256xf32>
    %c0_13 = arith.constant 0 : index
    %c0_14 = arith.constant 0 : index
    %25 = vector.load %arg5[%c0_13, %c0_14] : memref<1x256xf32, #tpu.memory_space<vmem>>, vector<1x256xf32>
    tpu.vector_store %arg5[%c0_13, %c0_14], %24 {strides = array<i32>} : memref<1x256xf32, #tpu.memory_space<vmem>>, vector<1x256xf32>,
    return
  }
  func.func @transform_0(%arg0: i32) -> (i32, i32) {
    %c0_i32 = arith.constant 0 : i32
    %c0_i32_0 = arith.constant 0 : i32
    %c0_i32_1 = arith.constant 0 : i32
    return %c0_i32, %c0_i32_0 : i32, i32
  }
  func.func @transform_1(%arg0: i32) -> (i32, i32) {
    %c0_i32 = arith.constant 0 : i32
    %c0_i32_0 = arith.constant 0 : i32
    %c0_i32_1 = arith.constant 0 : i32
    return %c0_i32, %c0_i32_0 : i32, i32
  }
  func.func @transform_2(%arg0: i32) -> (i32, i32) {
    %c0_i32 = arith.constant 0 : i32
    %c0_i32_0 = arith.constant 0 : i32
    return %c0_i32, %arg0 : i32, i32
  }
  func.func @transform_3(%arg0: i32) -> (i32, i32) {
    %c0_i32 = arith.constant 0 : i32
    %c0_i32_0 = arith.constant 0 : i32
    return %c0_i32, %arg0 : i32, i32
  }
  func.func @transform_4(%arg0: i32) -> (i32, i32) {
    %c0_i32 = arith.constant 0 : i32
    %c0_i32_0 = arith.constant 0 : i32
    return %c0_i32, %arg0 : i32, i32
  }
}

</mosaic_0001>

<bundles_post_ra>
// kernel: tpu_custom_call.1
= control target key start
LH: loop header
LB: loop body
LE: loop exit
PB: predicated region body
PF: predicated region fallthrough
CT: control target
= control target key end

     0   :  { %9 = vsyncpa [#allocation3], 0  ;;  %s1156_s0 = inlined_call_operand.vmem [shape: bf16[16,32], index: 0, kind: input, shape index: {}]   ;;  %s1157_s1 = inlined_call_operand.vmem [shape: f32[16,1], index: 1, kind: input, shape index: {}]   ;;  %s1158_s2 = inlined_call_operand.hbm [shape: bf16[32,384], index: 2, kind: input, shape index: {}]   ;;  %s1159_s3 = inlined_call_operand.hbm [shape: bf16[32,384], index: 3, kind: input, shape index: {}]   ;;  %s1160_s4 = inlined_call_operand.hbm [shape: f32[1,384], index: 4, kind: output, shape index: {}]  }
   0x1   :  { %11 = vsyncpa [#allocation3 + $0x1], 0 }
   0x2   :  { %12 = vsyncpa [#allocation6], 0 }
   0x3   :  { %14 = vsyncpa [#allocation6 + $0x1], 0 }
   0x4   :  { %15 = vsyncpa [#allocation4], 0 }
   0x5   :  { %17 = vsyncpa [#allocation4 + $0x1], 0  ;;  %s915_s15 = smov 0   ;;  %s917_s16 = smov 0  }
   0x6   :  { %s919_s17 = smov 0   ;;  %s921_s18 = smov 0  }
   0x7 LB: > { %s936_s19 = sadd.s32 4294967295, %s879_s18   ;;  %s641_s20 = sadd.s32 4294967294, %s879_s18   ;;  %s879_s18 = sphi %s921_s18, %s1172_s18   ;;  %s875_s17 = sphi %s919_s17, %s1171_s17   ;;  %s871_s16 = sphi %s917_s16, %s1170_s16   ;;  %s867_s15 = sphi %s915_s15, %s1169_s15  }
   0x8   : > { %s940_s21 = sadd.s32 1, %s879_s18   ;;  %s72_s22 = sadd.s32 1, %s875_s17 }
   0x9   : > { %s69_s23 = ssub.s32 %s879_s18, %s940_s21  ;;  %p79_p0 = scmp.ne.s32.totalorder %s875_s17, %s871_s16 }
   0xa   : > { %p70_p1 = scmp.eq.s32.totalorder %s69_s23, 0  ;;  %p80_p2 = scmp.eq.s32.totalorder %s879_s18, 0 }
   0xb   : > { %p85_p3 = scmp.ne.s32.totalorder %s871_s16, %s867_s15  ;;  %p86_p4 = scmp.eq.s32.totalorder %s936_s19, 0 }
   0xc   : > { %s952_s24 = scalar_select %p70_p1, %s875_s17, %s72_s22  }
   0xd   : > { %p954_p5 = por %p80_p2, %p79_p0  ;;  %p958_p6 = por %p86_p4, %p85_p3 }
   0xe   : > { %p135_p7 = scmp.eq.s32.totalorder %s936_s19, 1  ;;  %p141_p8 = scmp.eq.s32.totalorder %s641_s20, 1 }
   0xf   : > { %p1161_p11 = scmp.ge.s32.totalorder %s879_s18, 2 }
  0x10   : > { %p963_p9 = por %p135_p7, %p79_p0  ;;  %p967_p10 = por %p141_p8, %p85_p3 }
  0x11   : > { %163 = sbr.rel (%p1161_p11) target bundleno = 94 (0x5e), region = 24 }
  0x12   : > { %s1164_s27 = scalar_select %p963_p9, 1, 0 }
  0x13   : > { %s1165_s28 = scalar_select %p967_p10, 1, 0 }
  0x18   : > { %166 = sbr.rel (!%p954_p5) target bundleno = 59 (0x3b), region = 28  ;;  %s167_s29 = sand.u32 (%p954_p5), 1, %s875_s17  }
  0x19   : > { %s645_s30 = sshll.u32 (%p954_p5), %s879_s18, 1  ;;  %s644_s5 = sshll.u32 (%p954_p5), %s167_s29, 5 }
  0x1a   : > { %s173_s6 = ssub.s32 (%p954_p5), 3, %s645_s30  ;;  %s984_s9 = scalar_lea.sflag (%p954_p5), [#allocation3], %s167_s29 }
  0x1b   : > { %p174_p12 = scmp.lt.s32.totalorder (%p954_p5), %s173_s6, 2  ;;  %s171_s10 = scalar_lea.vmem (%p954_p5), [#allocation2], %s644_s5 }
  0x1f   : > { %s1174_s6 = smov (!%p174_p12, %s173_s6), 2 }
  0x20   : > { %s981_s7 = sshll.u32 %s1174_s6, 8 }
  0x21   : > { %s178_s8 = ssub.s32 512, %s981_s7 }
  0x22   : > { %179 = vsyncadd %s984_s9, %s178_s8  ;;  %p647_p13 = scmp.ne.s32.totalorder %s981_s7, 0  ;;  %s682_s11 = sshll.u32 %s879_s18, 7 }
  0x23   : > { %s992_s14 = scalar_lea.hbm %s1158_s2, %s682_s11  ;;  %s649_s20 = sshll.u32 %s1174_s6, 2 }
  0x24   : > { %s185_s22 = sshll.u32 %s171_s10, 4  ;;  %s753_s23 = scalar_lea.hbm %s992_s14, %s981_s7  ;;  %s995_s22 = int_to_ptr.vmem [resolvable:$true] %s185_s22 }
  0x25   : > { %p754_p0 = scmp.ne.s32.totalorder %s992_s14, %s753_s23  ;;  %s757_s5 = scalar_lea.hbm %s1158_s2, 768 }
  0x26   : > { %p758_p3 = scmp.lt.u32.totalorder %s992_s14, %s1158_s2  ;;  %p759_p4 = scmp.lt.u32.totalorder %s757_s5, %s753_s23 }
  0x27   : > { %p755_p1 = pnand %p754_p0, %p647_p13  ;;  %p761_p8 = scmp.lt.u32.totalorder %s753_s23, %s992_s14 }
  0x28   : > { %p760_p7 = por %p759_p4, %p758_p3 }
  0x29   : > { %p756_p2 = pneg %p755_p1 }
  0x2a   : > { %p762_p12 = por %p761_p8, %p760_p7 }
  0x2c   : > { %p763_p11 = pnand %p762_p12, %p756_p2 }
  0x2e   : > { %766 = shalt.err (!%p763_p11)
}
  0x2f   : > { %s767_s10 = scalar_lea.vmem %s995_s22, %s981_s7  ;;  %s881_s12 = smov [#allocation2]  }
  0x30   : > { %p768_p0 = scmp.ne.s32.totalorder %s995_s22, %s767_s10  ;;  %s771_s13 = sshll.u32 %s881_s12, 4  ;;  %s772_s13 = int_to_ptr.vmem [resolvable:$false] %s771_s13 }
  0x31   : > { %s773_s29 = scalar_lea.vmem %s772_s13, 1024  ;;  %p774_p9 = scmp.lt.s32.totalorder %s995_s22, %s772_s13 }
  0x32   : > { %p769_p1 = pnand %p768_p0, %p647_p13  ;;  %p775_p3 = scmp.lt.s32.totalorder %s773_s29, %s767_s10 }
  0x34   : > { %p770_p10 = pneg %p769_p1  ;;  %p776_p4 = por %p775_p3, %p774_p9 }
  0x36   : > { %p777_p7 = pnand %p776_p4, %p770_p10 }
  0x38   : > { %780 = shalt.err (!%p777_p7)
}
  0x39   : > { %s882_s23 = smov 192   ;;  %s883_s30 = smov 128  }
  0x3a   : > { %191 = dma.hbm_to_vmem [thread:$0]  (%p647_p13), %s992_s14, %s981_s7, %s995_s22, %s984_s9, %s882_s23, %s883_s30, %s649_s20  }
  0x3b PF: > { %194 = sbr.rel (!%p954_p5) target bundleno = 94 (0x5e), region = 32  ;;  %s195_s5 = sand.u32 (%p954_p5), 1, %s875_s17  }
  0x3c   : > { %s653_s8 = sshll.u32 (%p954_p5), %s879_s18, 1  ;;  %s652_s11 = sshll.u32 (%p954_p5), %s195_s5, 5 }
  0x3d   : > { %s201_s10 = ssub.s32 (%p954_p5), 3, %s653_s8  ;;  %s1034_s6 = scalar_lea.sflag (%p954_p5), [#allocation6], %s195_s5 }
  0x3e   : > { %p202_p9 = scmp.lt.s32.totalorder (%p954_p5), %s201_s10, 2  ;;  %s199_s7 = scalar_lea.vmem (%p954_p5), [#allocation5], %s652_s11 }
  0x42   : > { %s1176_s10 = smov (!%p202_p9, %s201_s10), 2 }
  0x43   : > { %s1031_s12 = sshll.u32 %s1176_s10, 8 }
  0x44   : > { %s206_s13 = ssub.s32 512, %s1031_s12 }
  0x45   : > { %207 = vsyncadd %s1034_s6, %s206_s13  ;;  %p655_p5 = scmp.ne.s32.totalorder %s1031_s12, 0  ;;  %s685_s25 = sshll.u32 %s879_s18, 7 }
  0x46   : > { %s1042_s20 = scalar_lea.hbm %s1159_s3, %s685_s25  ;;  %s657_s22 = sshll.u32 %s1176_s10, 2 }
  0x47   : > { %s213_s29 = sshll.u32 %s199_s7, 4  ;;  %s781_s23 = scalar_lea.hbm %s1042_s20, %s1031_s12  ;;  %s1045_s29 = int_to_ptr.vmem [resolvable:$true] %s213_s29 }
  0x48   : > { %p782_p10 = scmp.ne.s32.totalorder %s1042_s20, %s781_s23  ;;  %s785_s8 = scalar_lea.hbm %s1159_s3, 768 }
  0x49   : > { %p786_p2 = scmp.lt.u32.totalorder %s1042_s20, %s1159_s3  ;;  %p787_p8 = scmp.lt.u32.totalorder %s785_s8, %s781_s23 }
  0x4a   : > { %p783_p11 = pnand %p782_p10, %p655_p5  ;;  %p789_p0 = scmp.lt.u32.totalorder %s781_s23, %s1042_s20 }
  0x4b   : > { %p788_p12 = por %p787_p8, %p786_p2 }
  0x4c   : > { %p784_p13 = pneg %p783_p11 }
  0x4d   : > { %p790_p1 = por %p789_p0, %p788_p12 }
  0x4f   : > { %p791_p3 = pnand %p790_p1, %p784_p13 }
  0x51   : > { %794 = shalt.err (!%p791_p3)
}
  0x52   : > { %s795_s7 = scalar_lea.vmem %s1045_s29, %s1031_s12  ;;  %s884_s25 = smov [#allocation5]  }
  0x53   : > { %p796_p4 = scmp.ne.s32.totalorder %s1045_s29, %s795_s7  ;;  %s799_s9 = sshll.u32 %s884_s25, 4  ;;  %s800_s9 = int_to_ptr.vmem [resolvable:$false] %s799_s9 }
  0x54   : > { %s801_s14 = scalar_lea.vmem %s800_s9, 1024  ;;  %p802_p10 = scmp.lt.s32.totalorder %s1045_s29, %s800_s9 }
  0x55   : > { %p797_p7 = pnand %p796_p4, %p655_p5  ;;  %p803_p11 = scmp.lt.s32.totalorder %s801_s14, %s795_s7 }
  0x57   : > { %p798_p9 = pneg %p797_p7  ;;  %p804_p2 = por %p803_p11, %p802_p10 }
  0x59   : > { %p805_p8 = pnand %p804_p2, %p798_p9 }
  0x5b   : > { %808 = shalt.err (!%p805_p8)
}
  0x5c   : > { %s885_s23 = smov 192   ;;  %s886_s30 = smov 128  }
  0x5d   : > { %219 = dma.hbm_to_vmem [thread:$0]  (%p655_p5), %s1042_s20, %s1031_s12, %s1045_s29, %s1034_s6, %s885_s23, %s886_s30, %s657_s22  }
  0x5e PF: > { %p660_p13 = scmp.ge.s32.totalorder %s879_s18, 1  ;;  %p221_p12 = scmp.lt.s32.totalorder %s879_s18, 3 }
  0x60   : > { %p222_p0 = pnand %p660_p13, %p221_p12 }
  0x61   : > { %s1077_s5 = sand.u32 (!%p222_p0), 1, %s871_s16  }
  0x62   : > { %225 = sbr.rel (%p222_p0) target bundleno = 403 (0x193), region = 36  ;;  %s661_s8 = sshll.u32 (!%p222_p0), %s1077_s5, 5 }
  0x63   : > { %s228_s11 = scalar_lea.sflag (!%p222_p0), [#allocation3], %s1077_s5  ;;  %s231_s13 = scalar_lea.vmem (!%p222_p0), [#allocation2], %s661_s8 }
  0x69   : > { %854 = dma.done.wait (%p958_p6), %s228_s11, 512  }
  0x6a   : > { %856 = vsyncadd (%p958_p6), %s228_s11, 4294966784  ;;  %s237_s10 = scalar_lea.sflag [#allocation6], %s1077_s5  ;;  %s240_s12 = scalar_lea.vmem [#allocation5], %s661_s8 }
  0x6b   : > { %858 = dma.done.wait (%p958_p6), %s237_s10, 512  }
  0x6c   : > { %860 = vsyncadd (%p958_p6), %s237_s10, 4294966784  ;;  %v887_v0 = vmov 0   ;;  %v736_v1 = vld [vmem:[%s231_s13 + $0x4] ss:$8 sps:$4 sm:$0xff]   ;;  %v740_v3 = vld [vmem:[%s231_s13] ss:$8 sps:$4 sm:$0xff]  }
  0x6d   : > { %365 = vmatprep.mubr.bf16.mxu0 %v887_v0  ;;  %432 = vmatprep.mubr.bf16.mxu1 %v887_v0  ;;  %v738_v2 = vld [vmem:[%s240_s12 + $0x4] ss:$8 sps:$4 sm:$0xff]   ;;  %v741_v4 = vld [vmem:[%s240_s12] ss:$8 sps:$4 sm:$0xff]   ;;  %v742_v5 = vld [vmem:[%s231_s13 + $0x14] ss:$8 sps:$4 sm:$0xff]  }
  0x6e   : > { %735 = vset.pattern.permute.xlu0 %v887_v0  ;;  %333 = vmatprep.subr.bf16.mxu0 %v736_v1  ;;  %v744_v6 = vld [vmem:[%s240_s12 + $0x14] ss:$8 sps:$4 sm:$0xff]   ;;  %v746_v7 = vld [vmem:[%s231_s13 + $0x10] ss:$8 sps:$4 sm:$0xff]   ;;  %v288_v9 = vld [vmem:[%s1157_s1] sm:$0xff]  ;;  %vm329_vm0 = vcmask 261120  }
  0x6f   : > { %400 = vmatprep.subr.bf16.mxu1 %v738_v2  ;;  %334 = vmatpush1.bf16.msra.mxu0 %v740_v3  ;;  %v747_v8 = vld [vmem:[%s240_s12 + $0x10] ss:$8 sps:$4 sm:$0xff]   ;;  %v748_v10 = vld [vmem:[%s1156_s0] sm:$0xff]   ;;  %v289_v11 = vld [vmem:[%s1157_s1 + $0x8] sm:$0xff]  ;;  %s663_s25 = sshll.u32 %s1077_s5, 1  ;;  %s529_s14 = scalar_lea.sflag [#allocation4], %s1077_s5 }
  0x70   : > { %401 = vmatpush1.bf16.msra.mxu1 %v741_v4  ;;  %335 = vmatprep.subr.bf16.mxu0 %v742_v5  ;;  %s269_s9 = scalar_lea.vmem [#allocation7], %s663_s25  ;;  %p1166_p6 = scmp.ne.s32.totalorder %s1164_s27, 0 }
  0x71   : > { %402 = vmatprep.subr.bf16.mxu1 %v744_v6  ;;  %296 = vperm.xlu0 %735, %v288_v9   ;;  %s676_s23 = sshll.u32 (%p1166_p6), %s936_s19, 1 }
  0x72   : > { %s537_s30 = ssub.s32 (%p1166_p6), 3, %s676_s23 }
  0x73   : > { %336 = vmatpush1.bf16.msra.mxu0 %v746_v7  ;;  %p538_p5 = scmp.lt.s32.totalorder (%p1166_p6), %s537_s30, 2 }
  0x74   : > { %403 = vmatpush1.bf16.msra.mxu1 %v747_v8 }
  0x75   : > { %301 = vperm.xlu0 %735, %v289_v11  }
  0x76   : > { %669 = vmatmul.mubr.msk.bf16.vlgmr.msra.gmra.mrb[0].mxu0 %vm329_vm0, %v748_v10 }
  0x77   : > { %674 = vmatmul.mubr.msk.bf16.vlgmr.msra.gmra.mrb[0].mxu1 %vm329_vm0, %v748_v10 }
  0xf0   : > { %v297_v12 = vpop.permute.xlu0 %296 }
  0xf4   : > { %v302_v13 = vpop.permute.xlu0 %301 }
 0x149   : > { %v367_v14 = vpop.f32.mrb[0].mxu0 }
 0x14a   : > { %v434_v15 = vpop.f32.mrb[0].mxu1  ;;  %v368_v16 = vadd.f32 %v367_v14, %v297_v12  ;;  %v369_v18 = vpop.f32.mrb[1].mxu0 }
 0x14b   : > { %v435_v17 = vadd.f32 %v434_v15, %v297_v12  ;;  %v436_v19 = vpop.f32.mrb[1].mxu1  ;;  %v370_v20 = vadd.f32 %v369_v18, %v297_v12  ;;  %v371_v22 = vpop.f32.mrb[2].mxu0 }
 0x14c   : > { %v437_v21 = vadd.f32 %v436_v19, %v297_v12  ;;  %v438_v23 = vpop.f32.mrb[2].mxu1  ;;  %v372_v25 = vadd.f32 %v371_v22, %v302_v13  ;;  %v373_v26 = vpop.f32.mrb[3].mxu0  ;;  %v461_v28 = vmul.f32 %v368_v16, %v368_v16  ;;  %v511_v22 = vlaneseq }
 0x14d   : > { %v443_v24 = vmul.f32 %v435_v17, %v368_v16  ;;  %v440_v27 = vpop.f32.mrb[3].mxu1  ;;  %v439_v30 = vadd.f32 %v438_v23, %v302_v13  ;;  %v479_v31 = vmul.f32 %v435_v17, %v435_v17  ;;  %v374_v33 = vadd.f32 %v373_v26, %v302_v13 }
 0x14e   : > { %v444_v29 = vmul.f32 %v437_v21, %v370_v20  ;;  %v463_v32 = vmul.f32 %v372_v25, %v372_v25  ;;  %v441_v34 = vadd.f32 %v440_v27, %v302_v13  ;;  %v462_v35 = vmul.f32 %v370_v20, %v370_v20 }
 0x14f   : > { %v480_v36 = vmul.f32 %v437_v21, %v437_v21  ;;  %v445_v37 = vmul.f32 %v439_v30, %v372_v25  ;;  %v481_v38 = vmul.f32 %v439_v30, %v439_v30  ;;  %v464_v40 = vmul.f32 %v374_v33, %v374_v33 }
 0x150   : > { %v465_v39 = vadd.f32 %v463_v32, %v461_v28  ;;  %v446_v41 = vmul.f32 %v441_v34, %v374_v33  ;;  %v482_v42 = vmul.f32 %v441_v34, %v441_v34  ;;  %v888_v20 = vmov 1966171168  }
 0x151   : > { %v447_v43 = vadd.f32 %v445_v37, %v443_v24  ;;  %v483_v44 = vadd.f32 %v481_v38, %v479_v31  ;;  %v472_v46 = vadd.f32 %v464_v40, %v462_v35  ;;  %v509_v21 = vunpack.c.l.s4 %v888_v20 }
 0x152   : > { %v466_v45 = vrot.slane %v465_v39, 4  ;;  %v454_v47 = vadd.f32 %v446_v41, %v444_v29  ;;  %v490_v48 = vadd.f32 %v482_v42, %v480_v36  ;;  %v512_v26 = vshrl.u32 %v511_v22, 7 }
 0x153   : > { %v484_v49 = vrot.slane %v483_v44, 4  ;;  %v473_v51 = vrot.slane %v472_v46, 4  ;;  %v448_v59 = vrot.slane %v447_v43, 4  ;;  %v510_v25 = vunpack.c.0.s8 %v509_v21 }
 0x154   : > { %v467_v50 = vadd.f32 %v466_v45, %v465_v39  ;;  %v491_v52 = vrot.slane %v490_v48, 4  ;;  %v455_v63 = vrot.slane %v454_v47, 4  ;;  %vm525_vm1 = vcmp.lt.s32.totalorder %v511_v22, 256 }
 0x155   : > { %v485_v53 = vadd.f32 %v484_v49, %v483_v44  ;;  %v474_v55 = vadd.f32 %v473_v51, %v472_v46  ;;  %v449_v5 = vadd.f32 %v448_v59, %v447_v43  ;;  %v513_v33 = vsub.s32 %v510_v25, %v512_v26 }
 0x156   : > { %v468_v54 = vrot.slane %v467_v50, 2  ;;  %v492_v56 = vadd.f32 %v491_v52, %v490_v48  ;;  %v456_v9 = vadd.f32 %v455_v63, %v454_v47 }
 0x157   : > { %v486_v57 = vrot.slane %v485_v53, 2  ;;  %v475_v60 = vrot.slane %v474_v55, 2  ;;  %v450_v13 = vrot.slane %v449_v5, 2 }
 0x158   : > { %v469_v58 = vadd.f32 %v468_v54, %v467_v50  ;;  %v493_v61 = vrot.slane %v492_v56, 2  ;;  %v457_v16 = vrot.slane %v456_v9, 2 }
 0x159   : > { %v487_v62 = vadd.f32 %v486_v57, %v485_v53  ;;  %v476_v1 = vadd.f32 %v475_v60, %v474_v55  ;;  %v451_v18 = vadd.f32 %v450_v13, %v449_v5 }
 0x15a   : > { %v470_v0 = vrot.slane %v469_v58, 1  ;;  %v494_v2 = vadd.f32 %v493_v61, %v492_v56  ;;  %v458_v19 = vadd.f32 %v457_v16, %v456_v9 }
 0x15b   : > { %v488_v3 = vrot.slane %v487_v62, 1  ;;  %v477_v6 = vrot.slane %v476_v1, 1  ;;  %v452_v23 = vrot.slane %v451_v18, 1 }
 0x15c   : > { %v471_v4 = vadd.f32 %v470_v0, %v469_v58  ;;  %v495_v7 = vrot.slane %v494_v2, 1  ;;  %v459_v24 = vrot.slane %v458_v19, 1 }
 0x15d   : > { %v489_v8 = vadd.f32 %v488_v3, %v487_v62  ;;  %v478_v10 = vadd.f32 %v477_v6, %v476_v1  ;;  %v453_v27 = vadd.f32 %v452_v23, %v451_v18 }
 0x15e   : > { %v496_v11 = vadd.f32 %v495_v7, %v494_v2  ;;  %v460_v29 = vadd.f32 %v459_v24, %v458_v19 }
 0x15f   : > { %v497_v12 = vmul.f32 %v489_v8, %v471_v4 }
 0x160   : > { %v498_v14 = vmul.f32 %v496_v11, %v478_v10 }
 0x161   : > { %v499_v15 = vmax.f32 %v497_v12, 1e-12 }
 0x162   : > { %v500_v17 = vmax.f32 %v498_v14, 1e-12 }
 0x163   : > { %749 = vrsqrt.f32 %v499_v15 }
 0x164   : > { %751 = vrsqrt.f32 %v500_v17 }
 0x16d   : > { %v750_v28 = vpop.eup %749 }
 0x16e   : > { %v752_v30 = vpop.eup %751  ;;  %v503_v31 = vmul.f32 %v750_v28, %v453_v27 }
 0x16f   : > { %v504_v32 = vmul.f32 %v752_v30, %v460_v29 }
 0x171   : > { %v507_v34 = vcombine.low %v503_v31, %v504_v32  ;;  %535 = sbr.rel (!%p1166_p6) target bundleno = 403 (0x193), region = 48 }
 0x173   : > { %v514_v35 = vrot.slane %v507_v34, %v513_v33 }
 0x175   : > { %v521_v36 = vrot.slane %v514_v35, %v513_v33 }
 0x177   : > { %527 = vst.msk [vmem:[%s269_s9] sm:$0x3] %vm525_vm1, %v521_v36 }
 0x178   : > { %s1178_s30 = smov (!%p538_p5, %s537_s30), 2 }
 0x179   : > { %s1104_s8 = sshll.u32 %s1178_s30, 4 }
 0x17a   : > { %s542_s11 = ssub.s32 32, %s1104_s8 }
 0x17b   : > { %543 = vsyncadd %s529_s14, %s542_s11  ;;  %p678_p1 = scmp.ne.s32.totalorder %s1104_s8, 0  ;;  %s688_s13 = sshll.u32 %s936_s19, 5 }
 0x17c   : > { %s1114_s12 = scalar_lea.hbm %s1160_s4, %s688_s13  ;;  %s548_s26 = sshll.u32 %s269_s9, 4  ;;  %s549_s26 = int_to_ptr.vmem [resolvable:$true] %s548_s26 }
 0x17d   : > { %s809_s6 = scalar_lea.vmem %s549_s26, %s1104_s8  ;;  %s889_s20 = smov [#allocation7]  }
 0x17e   : > { %p810_p3 = scmp.ne.s32.totalorder %s549_s26, %s809_s6  ;;  %s813_s22 = sshll.u32 %s889_s20, 4  ;;  %s814_s22 = int_to_ptr.vmem [resolvable:$false] %s813_s22 }
 0x17f   : > { %s815_s29 = scalar_lea.vmem %s814_s22, 64  ;;  %p816_p9 = scmp.lt.s32.totalorder %s549_s26, %s814_s22 }
 0x180   : > { %p811_p4 = pnand %p810_p3, %p678_p1  ;;  %p817_p10 = scmp.lt.s32.totalorder %s815_s29, %s809_s6 }
 0x182   : > { %p812_p7 = pneg %p811_p4  ;;  %p818_p11 = por %p817_p10, %p816_p9 }
 0x184   : > { %p819_p2 = pnand %p818_p11, %p812_p7 }
 0x186   : > { %822 = shalt.err (!%p819_p2)
}
 0x187   : > { %s823_s19 = scalar_lea.hbm %s1114_s12, %s1104_s8  ;;  %s827_s9 = scalar_lea.hbm %s1160_s4, 48 }
 0x188   : > { %p824_p8 = scmp.ne.s32.totalorder %s1114_s12, %s823_s19  ;;  %p828_p0 = scmp.lt.u32.totalorder %s1114_s12, %s1160_s4 }
 0x189   : > { %p829_p6 = scmp.lt.u32.totalorder %s827_s9, %s823_s19  ;;  %p831_p3 = scmp.lt.u32.totalorder %s823_s19, %s1114_s12 }
 0x18a   : > { %p825_p13 = pnand %p824_p8, %p678_p1 }
 0x18b   : > { %p830_p5 = por %p829_p6, %p828_p0 }
 0x18c   : > { %p826_p12 = pneg %p825_p13 }
 0x18d   : > { %p832_p4 = por %p831_p3, %p830_p5 }
 0x18f   : > { %p833_p7 = pnand %p832_p4, %p826_p12 }
 0x191   : > { %836 = shalt.err (!%p833_p7)
}
 0x192   : > { %551 = dma.vmem_to_hbm [thread:$0]  (%p678_p1), %s549_s26, %s1104_s8, %s1114_s12, %s529_s14  }
 0x193 PF: > { %s560_s11 = sand.u32 1, %s867_s15   ;;  %p1167_p9 = scmp.ne.s32.totalorder %s1165_s28, 0 }
 0x194   : > { %p1168_p10 = scmp.ge.s32.totalorder %s879_s18, 2  ;;  %s561_s13 = scalar_lea.sflag [#allocation4], %s560_s11 }
 0x196   : > { %p693_p11 = pnand %p1168_p10, %p1167_p9 }
 0x198   : > { %862 = dma.done.wait (!%p693_p11), %s561_s13, 32  }
 0x199   : > { %864 = vsyncadd (!%p693_p11), %s561_s13, 4294967264  ;;  %p20_p2 = scmp.ge.s32.totalorder %s940_s21, 4   ;;  %s1169_s15 = smov %s871_s16 }
 0x19a   : > { %s1170_s16 = smov %s875_s17  ;;  %s1171_s17 = smov %s952_s24 }
 0x19b   : > { %s1172_s18 = smov %s940_s21  ;;  %22 = sbr.rel (!%p20_p2) target bundleno = 7 (0x7), region = 94 }
 0x1a2   :  { %566 = vsyncpa [#allocation3], 1 }
 0x1a3   :  { %568 = vsyncpa [#allocation3 + $0x1], 1 }
 0x1a4   :  { %569 = vsyncpa [#allocation6], 1 }
 0x1a5   :  { %571 = vsyncpa [#allocation6 + $0x1], 1 }
 0x1a6   :  { %572 = vsyncpa [#allocation4], 1 }
 0x1a7   :  { %574 = vsyncpa [#allocation4 + $0x1], 1 }

</bundles_post_ra>
